<compile_context>
chip_gen: v5e
topology: v5e:2x2
jax: 0.10.0
libtpu: 0.0.40
codegen_flags: <defaults>
</compile_context>

<pallas_src>
import jax
import jax.numpy as jnp
from jax.experimental import pallas as pl
from jax.experimental.pallas import tpu as pltpu


def _kpt3d_loss_kernel(pred_ref, gt_ref, mask_ref, invden_ref, out_ref):
    diff = pred_ref[...] - gt_ref[...]            # (3, K, TN) f32
    sq = diff * diff                              # abs is redundant before squaring
    d_sum = jnp.sum(sq, axis=0)                   # (K, TN): leading-axis reduce -> VALU adds
    mask = mask_ref[...]                          # (K, TN)

    # factor = K / (count_nonzero(mask, over K) + 1e-9), one value per sample (lane)
    nnz = jnp.sum((mask != 0.0).astype(jnp.float32), axis=0, keepdims=True)   # (1, TN)
    factor = jnp.float32(mask.shape[0]) / (nnz + 1e-9)                        # (1, TN)

    # e = d_sum / (2*sigmas)^2 / 2  ==  d_sum * 1/(8*sigmas^2)   (precomputed in wrapper)
    e = d_sum * invden_ref[...]                   # (K, TN); (K,1) broadcast over lanes
    vals = factor * ((1.0 - jnp.exp(-e)) * mask)  # (K, TN)

    # Per-tile partial sum over K only; keep lanes dense, finish the reduce in the wrapper.
    out_ref[...] = jnp.sum(vals, axis=0, keepdims=True)[None]   # (1, 1, TN)


def keypoint_3d_loss(pred_3dkpts, gt_3dkpts, kpt_3dmask, sigmas_3d):
    """pred_3dkpts, gt_3dkpts: (N, K, 3); kpt_3dmask: (N, K); sigmas_3d: (K,). Returns scalar."""
    N, K, D = pred_3dkpts.shape

    # Lane tile: multiple of 128. 512 gets close to HBM roofline; 128 for tiny batches.
    tn = 512 if N >= 512 else 128
    n_pad = ((N + tn - 1) // tn) * tn
    n_tiles = n_pad // tn

    pred = pred_3dkpts.astype(jnp.float32)
    gt = gt_3dkpts.astype(jnp.float32)
    mask = kpt_3dmask.astype(jnp.float32)
    if n_pad != N:
        pad = n_pad - N
        pred = jnp.pad(pred, ((0, pad), (0, 0), (0, 0)))
        gt = jnp.pad(gt, ((0, pad), (0, 0), (0, 0)))
        mask = jnp.pad(mask, ((0, pad), (0, 0)))

    # Single relayout pass to the lane-dense kernel layout (N on lanes).
    # TODO(synk): have the producer emit (D, K, N) / (K, N) directly to drop this HBM pass.
    pred_t = jnp.transpose(pred, (2, 1, 0))   # (D, K, N_pad)
    gt_t = jnp.transpose(gt, (2, 1, 0))       # (D, K, N_pad)
    mask_t = jnp.transpose(mask, (1, 0))      # (K, N_pad)
    invden = (1.0 / (8.0 * sigmas_3d.astype(jnp.float32) ** 2)).reshape(K, 1)  # (K, 1)

    partials = pl.pallas_call(
        _kpt3d_loss_kernel,
        out_shape=jax.ShapeDtypeStruct((n_tiles, 1, tn), jnp.float32),
        grid_spec=pltpu.PrefetchScalarGridSpec(
            num_scalar_prefetch=0,
            grid=(n_tiles,),
            in_specs=[
                pl.BlockSpec((D, K, tn), lambda i: (0, 0, i)),
                pl.BlockSpec((D, K, tn), lambda i: (0, 0, i)),
                pl.BlockSpec((K, tn), lambda i: (0, i)),
                pl.BlockSpec((K, 1), lambda i: (0, 0)),
            ],
            out_specs=pl.BlockSpec((1, 1, tn), lambda i: (i, 0, 0)),
        ),
        compiler_params=pltpu.CompilerParams(
            dimension_semantics=("parallel",),   # independent tiles: shards across TCs on v7x
        ),
    )(pred_t, gt_t, mask_t, invden)

    # .mean() over the true (N, K) elements (padding contributes exactly zero).
    return jnp.sum(partials) / jnp.float32(N * K)


def _reference_loss(pred, gt, mask, sigmas):
    d = jnp.abs(pred - gt)
    d_sum = jnp.sum(d ** 2, axis=-1)
    factor = mask.shape[1] / (jnp.sum((mask != 0).astype(jnp.float32), axis=1) + 1e-9)
    e = d_sum / (2.0 * sigmas) ** 2 / 2.0
    return jnp.mean(factor[:, None] * ((1.0 - jnp.exp(-e)) * mask))


if __name__ == "__main__":
    K, D = 17, 3  # keypoints, 3D coords
    sigmas_3d = jnp.linspace(0.025, 0.107, K, dtype=jnp.float32)

    # Two cases: tiny batch (single tile + lane padding) and a multi-tile ragged batch.
    for case_idx, N in enumerate((2, 300)):
        key = jax.random.fold_in(jax.random.PRNGKey(0), case_idx)
        k_pred, k_gt, k_mask = jax.random.split(key, 3)

        pred_3dkpts = jax.random.normal(k_pred, (N, K, D), dtype=jnp.float32)
        gt_3dkpts = jax.random.normal(k_gt, (N, K, D), dtype=jnp.float32)
        kpt_3dmask = jax.random.bernoulli(k_mask, 0.7, (N, K)).astype(jnp.float32)

        loss = keypoint_3d_loss(pred_3dkpts, gt_3dkpts, kpt_3dmask, sigmas_3d)
        jax.block_until_ready(loss)

        ref = _reference_loss(pred_3dkpts, gt_3dkpts, kpt_3dmask, sigmas_3d)
        assert jnp.allclose(loss, ref, rtol=1e-4, atol=1e-5), (N, loss, ref)

    print("KERNEL_OK")
</pallas_src>

<mosaic_0001>
module attributes {stable_mosaic.version = 11 : i64} {
  func.func @_kpt3d_loss_kernel(%arg0: i32, %arg1: memref<3x17x128xf32, #tpu.memory_space<vmem>>, %arg2: memref<3x17x128xf32, #tpu.memory_space<vmem>>, %arg3: memref<17x128xf32, #tpu.memory_space<vmem>>, %arg4: memref<17x1xf32, #tpu.memory_space<vmem>>, %arg5: memref<1x1x128xf32, #tpu.memory_space<vmem>>) attributes {dimension_semantics = [#tpu.dimension_semantics<parallel>], iteration_bounds = array<i64: 1>, scalar_prefetch = 0 : i64, scratch_operands = 0 : i64, tpu.core_type = #tpu.core_type<tc>, window_params = [{transform_indices = @transform_0, window_bounds = array<i64: 3, 17, 128>}, {transform_indices = @transform_1, window_bounds = array<i64: 3, 17, 128>}, {transform_indices = @transform_2, window_bounds = array<i64: 17, 128>}, {pipeline_mode = #tpu.pipeline_mode<synchronous>, transform_indices = @transform_3, window_bounds = array<i64: 17, 1>}, {transform_indices = @transform_4, window_bounds = array<i64: 1, 1, 128>}]} {
    %c0 = arith.constant 0 : index
    %c0_0 = arith.constant 0 : index
    %c0_1 = arith.constant 0 : index
    %0 = vector.load %arg1[%c0, %c0_0, %c0_1] : memref<3x17x128xf32, #tpu.memory_space<vmem>>, vector<3x17x128xf32>
    %c0_2 = arith.constant 0 : index
    %c0_3 = arith.constant 0 : index
    %c0_4 = arith.constant 0 : index
    %1 = vector.load %arg2[%c0_2, %c0_3, %c0_4] : memref<3x17x128xf32, #tpu.memory_space<vmem>>, vector<3x17x128xf32>
    %2 = arith.subf %0, %1 : vector<3x17x128xf32>
    %3 = arith.mulf %2, %2 : vector<3x17x128xf32>
    %cst = arith.constant dense<0.000000e+00> : vector<17x128xf32>
    %4 = vector.multi_reduction <add>, %3, %cst [0] : vector<3x17x128xf32> to vector<17x128xf32>
    %c0_5 = arith.constant 0 : index
    %c0_6 = arith.constant 0 : index
    %5 = vector.load %arg3[%c0_5, %c0_6] : memref<17x128xf32, #tpu.memory_space<vmem>>, vector<17x128xf32>
    %cst_7 = arith.constant 0.000000e+00 : f32
    %6 = vector.broadcast %cst_7 : f32 to vector<17x128xf32>
    %7 = arith.cmpf one, %5, %6 : vector<17x128xf32>
    %8 = arith.extui %7 : vector<17x128xi1> to vector<17x128xi32>
    %9 = arith.sitofp %8 : vector<17x128xi32> to vector<17x128xf32>
    %cst_8 = arith.constant dense<0.000000e+00> : vector<128xf32>
    %10 = vector.multi_reduction <add>, %9, %cst_8 [0] : vector<17x128xf32> to vector<128xf32>
    %11 = vector.shape_cast %10 : vector<128xf32> to vector<1x128xf32>
    %cst_9 = arith.constant 9.99999971E-10 : f32
    %12 = vector.broadcast %cst_9 : f32 to vector<1x128xf32>
    %13 = arith.addf %11, %12 : vector<1x128xf32>
    %cst_10 = arith.constant 1.700000e+01 : f32
    %14 = vector.broadcast %cst_10 : f32 to vector<1x128xf32>
    %15 = arith.divf %14, %13 : vector<1x128xf32>
    %c0_11 = arith.constant 0 : index
    %c0_12 = arith.constant 0 : index
    %16 = vector.load %arg4[%c0_11, %c0_12] : memref<17x1xf32, #tpu.memory_space<vmem>>, vector<17x1xf32>
    %17 = vector.broadcast %16 : vector<17x1xf32> to vector<17x128xf32>
    %18 = arith.mulf %4, %17 : vector<17x128xf32>
    %cst_13 = arith.constant 0.000000e+00 : f32
    %19 = vector.broadcast %cst_13 : f32 to vector<17x128xf32>
    %20 = arith.subf %19, %18 : vector<17x128xf32>
    %21 = math.exp %20 : vector<17x128xf32>
    %cst_14 = arith.constant 1.000000e+00 : f32
    %22 = vector.broadcast %cst_14 : f32 to vector<17x128xf32>
    %23 = arith.subf %22, %21 : vector<17x128xf32>
    %24 = arith.mulf %23, %5 : vector<17x128xf32>
    %25 = vector.broadcast %15 : vector<1x128xf32> to vector<17x128xf32>
    %26 = arith.mulf %25, %24 : vector<17x128xf32>
    %cst_15 = arith.constant dense<0.000000e+00> : vector<128xf32>
    %27 = vector.multi_reduction <add>, %26, %cst_15 [0] : vector<17x128xf32> to vector<128xf32>
    %28 = vector.shape_cast %27 : vector<128xf32> to vector<1x128xf32>
    %29 = vector.shape_cast %28 : vector<1x128xf32> to vector<1x1x128xf32>
    %c0_16 = arith.constant 0 : index
    %c0_17 = arith.constant 0 : index
    %c0_18 = arith.constant 0 : index
    %30 = vector.load %arg5[%c0_16, %c0_17, %c0_18] : memref<1x1x128xf32, #tpu.memory_space<vmem>>, vector<1x1x128xf32>
    tpu.vector_store %arg5[%c0_16, %c0_17, %c0_18], %29 {strides = array<i32>} : memref<1x1x128xf32, #tpu.memory_space<vmem>>, vector<1x1x128xf32>,
    return
  }
  func.func @transform_0(%arg0: i32) -> (i32, i32, i32) {
    %c0_i32 = arith.constant 0 : i32
    %c0_i32_0 = arith.constant 0 : i32
    %c0_i32_1 = arith.constant 0 : i32
    return %c0_i32, %c0_i32_0, %arg0 : i32, i32, i32
  }
  func.func @transform_1(%arg0: i32) -> (i32, i32, i32) {
    %c0_i32 = arith.constant 0 : i32
    %c0_i32_0 = arith.constant 0 : i32
    %c0_i32_1 = arith.constant 0 : i32
    return %c0_i32, %c0_i32_0, %arg0 : i32, i32, i32
  }
  func.func @transform_2(%arg0: i32) -> (i32, i32) {
    %c0_i32 = arith.constant 0 : i32
    %c0_i32_0 = arith.constant 0 : i32
    return %c0_i32, %arg0 : i32, i32
  }
  func.func @transform_3(%arg0: i32) -> (i32, i32) {
    %c0_i32 = arith.constant 0 : i32
    %c0_i32_0 = arith.constant 0 : i32
    %c0_i32_1 = arith.constant 0 : i32
    return %c0_i32, %c0_i32_0 : i32, i32
  }
  func.func @transform_4(%arg0: i32) -> (i32, i32, i32) {
    %c0_i32 = arith.constant 0 : i32
    %c0_i32_0 = arith.constant 0 : i32
    %c0_i32_1 = arith.constant 0 : i32
    return %arg0, %c0_i32, %c0_i32_0 : i32, i32, i32
  }
}

</mosaic_0001>

<bundles_post_ra>
// kernel: tpu_custom_call.1
= control target key start
LH: loop header
LB: loop body
LE: loop exit
PB: predicated region body
PF: predicated region fallthrough
CT: control target
= control target key end

     0   :  { %v208_v2 = vmov 0   ;;  %s328_s0 = inlined_call_operand.vmem [shape: f32[3,17,128], index: 0, kind: input, shape index: {}]   ;;  %s329_s1 = inlined_call_operand.vmem [shape: f32[3,17,128], index: 1, kind: input, shape index: {}]   ;;  %s330_s2 = inlined_call_operand.vmem [shape: f32[17,128], index: 2, kind: input, shape index: {}]   ;;  %s331_s3 = inlined_call_operand.vmem [shape: f32[17,1], index: 3, kind: input, shape index: {}]   ;;  %s332_s4 = inlined_call_operand.hbm [shape: f32[1,1,128], index: 4, kind: output, shape index: {}]  }
   0x1   :  { %v101_v0 = vld [vmem:[%s331_s3] sm:$0xff]  ;;  %v103_v1 = vld [vmem:[%s331_s3 + $0x10] sm:$0x1]  ;;  %172 = vset.pattern.permute.xlu0 %v208_v2  ;;  %173 = vset.pattern.permute.xlu1 %v208_v2 }
   0x2   :  { %9 = vsyncpa [#allocation3], 0  ;;  %106 = vperm.xlu0 %172, %v101_v0   ;;  %116 = vperm.xlu1 %173, %v103_v1   ;;  %v102_v3 = vld [vmem:[%s331_s3 + $0x8] sm:$0xff]  ;;  %v248_v4 = vld [vmem:[%s330_s2] sm:$0xff]  ;;  %v209_v7 = vmov 0.0   ;;  %vm58_vm3 = vcmask 1040384  }
   0x3   :  { %v253_v5 = vld [vmem:[%s330_s2 + $0x8] sm:$0xff]  ;;  %v258_v6 = vld [vmem:[%s330_s2 + $0x10] sm:$0x1]  ;;  %vm67_vm0 = vcmp.ne.f32.partialorder %v248_v4, 0.0  ;;  %v18_v23 = vld [vmem:[%s328_s0] sm:$0xff]  ;;  %s157_s9 = sshll.u32 %s332_s4, 4  ;;  %s158_s9 = int_to_ptr.hbm [resolvable:$true] %s157_s9 }
   0x4   :  { %vm68_vm1 = vcmp.ne.f32.partialorder %v253_v5, 0.0  ;;  %vm69_vm2 = vcmp.ne.f32.partialorder %v258_v6, 0.0  ;;  %v166_v8 = vsel %vm67_vm0, 1.0, %v209_v7  ;;  %v20_v18 = vld [vmem:[%s328_s0 + $0x10] sm:$0x1]  ;;  %v21_v24 = vld [vmem:[%s328_s0 + $0x18] sm:$0xff] }
   0x5   :  { %v167_v9 = vsel %vm68_vm1, 1.0, %v209_v7  ;;  %v168_v10 = vsel %vm69_vm2, 1.0, %v209_v7  ;;  %v23_v20 = vld [vmem:[%s328_s0 + $0x28] sm:$0x1]  ;;  %v29_v21 = vld [vmem:[%s329_s1 + $0x10] sm:$0x1] }
   0x6   :  { %v76_v11 = vadd.f32 %v167_v9, %v166_v8  ;;  %v77_v12 = vsel %vm58_vm3, %v168_v10, 0.0  ;;  %v32_v22 = vld [vmem:[%s329_s1 + $0x28] sm:$0x1]  ;;  %v27_v25 = vld [vmem:[%s329_s1] sm:$0xff]  ;;  %v30_v26 = vld [vmem:[%s329_s1 + $0x18] sm:$0xff]  ;;  %v38_v27 = vsub.f32 %v20_v18, %v29_v21 }
   0x7   :  { %v41_v28 = vsub.f32 %v23_v20, %v32_v22  ;;  %v26_v30 = vld [vmem:[%s328_s0 + $0x40] sm:$0x1]  ;;  %v36_v32 = vsub.f32 %v18_v23, %v27_v25  ;;  %v39_v33 = vsub.f32 %v21_v24, %v30_v26  ;;  %v24_v34 = vld [vmem:[%s328_s0 + $0x30] sm:$0xff]  ;;  %v19_v43 = vld [vmem:[%s328_s0 + $0x8] sm:$0xff] }
   0x8   :  { %v78_v13 = vadd.f32 %v77_v12, %v76_v11  ;;  %v35_v31 = vld [vmem:[%s329_s1 + $0x40] sm:$0x1]  ;;  %v33_v35 = vld [vmem:[%s329_s1 + $0x30] sm:$0xff]  ;;  %v47_v37 = vmul.f32 %v38_v27, %v38_v27  ;;  %v28_v45 = vld [vmem:[%s329_s1 + $0x8] sm:$0xff] }
   0x9   :  { %v44_v36 = vsub.f32 %v26_v30, %v35_v31  ;;  %v50_v38 = vmul.f32 %v41_v28, %v41_v28  ;;  %v42_v40 = vsub.f32 %v24_v34, %v33_v35  ;;  %v45_v41 = vmul.f32 %v36_v32, %v36_v32  ;;  %v22_v44 = vld [vmem:[%s328_s0 + $0x20] sm:$0xff]  ;;  %v25_v55 = vld [vmem:[%s328_s0 + $0x38] sm:$0xff]  ;;  %s210_s0 = smov [#allocation2]  }
   0xa   :  { %111 = vperm.xlu0 %172, %v102_v3   ;;  %v79_v14 = vrot.slane %v78_v13, 4  ;;  %v48_v42 = vmul.f32 %v39_v33, %v39_v33  ;;  %v31_v46 = vld [vmem:[%s329_s1 + $0x20] sm:$0xff]  ;;  %v59_v48 = vsel %vm58_vm3, %v47_v37, 0.0  ;;  %v37_v52 = vsub.f32 %v19_v43, %v28_v45  ;;  %v34_v56 = vld [vmem:[%s329_s1 + $0x38] sm:$0xff]  ;;  %s155_s1 = sshll.u32 %s210_s0, 4  ;;  %s156_s1 = int_to_ptr.vmem [resolvable:$true] %s155_s1 }
   0xb   :  { %v53_v47 = vmul.f32 %v44_v36, %v44_v36  ;;  %v60_v49 = vsel %vm58_vm3, %v50_v38, 0.0  ;;  %v51_v50 = vmul.f32 %v42_v40, %v42_v40  ;;  %v40_v53 = vsub.f32 %v22_v44, %v31_v46 }
   0xc   :  { %v80_v15 = vadd.f32 %v79_v14, %v78_v13  ;;  %v54_v51 = vadd.f32 %v48_v42, %v45_v41  ;;  %v61_v54 = vadd.f32 %v60_v49, %v59_v48  ;;  %v43_v60 = vsub.f32 %v25_v55, %v34_v56 }
   0xd   :  { %v62_v57 = vsel %vm58_vm3, %v53_v47, 0.0  ;;  %v46_v61 = vmul.f32 %v37_v52, %v37_v52  ;;  %v49_v62 = vmul.f32 %v40_v53, %v40_v53 }
   0xe   :  { %v81_v16 = vrot.slane %v80_v15, 2  ;;  %v55_v59 = vadd.f32 %v54_v51, %v51_v50  ;;  %v63_v63 = vadd.f32 %v62_v57, %v61_v54  ;;  %v52_v7 = vmul.f32 %v43_v60, %v43_v60 }
   0xf   :  { %v56_v8 = vadd.f32 %v49_v62, %v46_v61 }
  0x10   :  { %v82_v17 = vadd.f32 %v81_v16, %v80_v15 }
  0x11   :  { %v57_v14 = vadd.f32 %v56_v8, %v52_v7 }
  0x12   :  { %v83_v19 = vrot.slane %v82_v17, 1 }
  0x14   :  { %v84_v29 = vadd.f32 %v83_v19, %v82_v17 }
  0x16   :  { %v85_v39 = vadd.f32 1e-09, %v84_v29 }
  0x18   :  { %174 = vrcp.f32 %v85_v39  ;;  %vm91_vm4 = vweird.f32 %v85_v39  ;;  %v97_v19 = vand.u32 2147483648, %v85_v39  ;;  %v95_v22 = vand.u32 2147483647, %v85_v39 }
  0x1a   :  { %v98_v25 = vor.u32 1.1754944e-38, %v97_v19  ;;  %vm96_vm7 = vcmp.eq.f32.partialorder %v95_v22, 8.507059e+37 }
  0x1e   :  { %v175_v58 = vpop.eup %174 }
  0x1f   :  { %v87_v0 = vmul.f32 %v175_v58, %v85_v39  ;;  %vm92_vm5 = vweird.f32 %v175_v58 }
  0x20   :  { %vm93_vm6 = vmor %vm91_vm4, %vm92_vm5 }
  0x21   :  { %v88_v11 = vsub.f32 1.0, %v87_v0 }
  0x23   :  { %v89_v16 = vmul.f32 %v175_v58, %v88_v11 }
  0x25   :  { %v90_v21 = vadd.f32 %v175_v58, %v89_v16 }
  0x27   :  { %v94_v27 = vsel %vm93_vm6, %v175_v58, %v90_v21 }
  0x28   :  { %v99_v30 = vsel %vm96_vm7, %v98_v25, %v94_v27 }
  0x29   :  { %v100_v33 = vmul.f32 17.0, %v99_v30 }
  0x74   :  { %v107_v1 = vpop.permute.xlu0 %106  ;;  %v117_v2 = vpop.permute.xlu1 %116 }
  0x75   :  { %v119_v3 = vmul.f32 %v107_v1, %v55_v59  ;;  %v121_v9 = vmul.f32 %v117_v2, %v63_v63 }
  0x77   :  { %v122_v10 = vsub.f32 0.0, %v119_v3  ;;  %v124_v12 = vsub.f32 0.0, %v121_v9 }
  0x79   :  { %v125_v13 = vmul.f32 1.442695, %v122_v10  ;;  %v129_v15 = vmul.f32 1.442695, %v124_v12 }
  0x7b   :  { %176 = vpow2.f32 %v129_v15 }
  0x7c   :  { %v112_v17 = vpop.permute.xlu0 %111  ;;  %178 = vpow2.f32 %v125_v13 }
  0x7d   :  { %v120_v18 = vmul.f32 %v112_v17, %v57_v14 }
  0x7f   :  { %v123_v20 = vsub.f32 0.0, %v120_v18 }
  0x81   :  { %v127_v23 = vmul.f32 1.442695, %v123_v20  ;;  %v177_v24 = vpop.eup %176 }
  0x82   :  { %v179_v26 = vpop.eup %178  ;;  %v133_v28 = vsub.f32 1.0, %v177_v24 }
  0x83   :  { %180 = vpow2.f32 %v127_v23  ;;  %v131_v29 = vsub.f32 1.0, %v179_v26 }
  0x84   :  { %v136_v31 = vmul.f32 %v133_v28, %v258_v6 }
  0x85   :  { %v134_v34 = vmul.f32 %v131_v29, %v248_v4 }
  0x86   :  { %v139_v36 = vmul.f32 %v136_v31, %v100_v33 }
  0x87   :  { %v137_v38 = vmul.f32 %v134_v34, %v100_v33 }
  0x88   :  { %v141_v40 = vsel %vm58_vm3, %v139_v36, 0.0 }
  0x89   :  { %v181_v32 = vpop.eup %180 }
  0x8a   :  { %v132_v35 = vsub.f32 1.0, %v181_v32 }
  0x8c   :  { %v135_v37 = vmul.f32 %v132_v35, %v253_v5 }
  0x8e   :  { %v138_v39 = vmul.f32 %v135_v37, %v100_v33 }
  0x90   :  { %v140_v41 = vadd.f32 %v138_v39, %v137_v38 }
  0x92   :  { %v142_v42 = vadd.f32 %v141_v40, %v140_v41 }
  0x94   :  { %v143_v43 = vrot.slane %v142_v42, 4 }
  0x96   :  { %v144_v44 = vadd.f32 %v143_v43, %v142_v42 }
  0x98   :  { %v145_v45 = vrot.slane %v144_v44, 2 }
  0x9a   :  { %v146_v46 = vadd.f32 %v145_v45, %v144_v44 }
  0x9c   :  { %v147_v4 = vrot.slane %v146_v46, 1 }
  0x9e   :  { %v148_v6 = vadd.f32 %v147_v4, %v146_v46 }
  0xa0   :  { %149 = vst [vmem:[#allocation2] sm:$0x1] %v148_v6 }
  0xa1   :  { %160 = dma.vmem_to_hbm [thread:$0]  %s156_s1, 16, %s158_s9, [#allocation3]  }
  0xa2   :  { %206 = dma.done.wait [#allocation3], 16  }
  0xa3   :  { %207 = vsyncadd [#allocation3], 4294967280 }
  0xa4   :  { %165 = vsyncpa [#allocation3], 1 }

</bundles_post_ra>
